<compile_context>
chip_gen: v6e
topology: v6e:2x2x1
jax: 0.10.0
libtpu: 0.0.40
codegen_flags: <defaults>
</compile_context>

<pallas_src>
from functools import partial

import jax
import jax.numpy as jnp
from jax.experimental import pallas as pl
from jax.experimental.pallas import tpu as pltpu


def _round_up(v, m):
    return ((v + m - 1) // m) * m


def _gaussian_layer_kernel(*refs, dz, sample):
    if sample:
        x_ref, w_ref, b_ref, mask_ref, eps_ref, out_ref = refs
    else:
        x_ref, w_ref, b_ref, mask_ref, out_ref = refs
        eps_ref = None

    x = x_ref[...]                                        # (tile, Din)
    # One fused MXU matmul for [mean | logvar] -> (tile, 2*Dz), f32 accumulation.
    ml = jnp.dot(x, w_ref[...],
                 preferred_element_type=jnp.float32) + b_ref[...]

    mean = ml[:, :dz]                                     # static slices: cheap
    mask = mask_ref[...]                                  # (tile, 1), broadcasts
    if sample:
        logvar = ml[:, dz:]
        z = (mean + jnp.exp(0.5 * logvar) * eps_ref[...]) * mask
    else:
        z = mean * mask

    # Single fused, lane-wider store: [mean | logvar | z]  (tile, 3*Dz).
    out_ref[...] = jnp.concatenate([ml, z], axis=-1).astype(out_ref.dtype)


def gaussian_layer_forward(x, mask, params, eps=None, sample=True,
                           row_tile=None):
    """x: [B, L, Din], mask: [B, L], eps: [B, L, Dz] (only needed if sample)."""
    B, L, Din = x.shape
    Dz = params["wm"].shape[1]
    N = B * L
    dt = x.dtype
    itemsize = jnp.dtype(dt).itemsize
    sub = max(8, 32 // itemsize)           # sublane rows: 8 (f32), 16 (bf16), 32 (i8)
    lane = 128

    # ---- chip-aware VMEM budget / limit --------------------------------------
    try:
        vmem_cap = int(pltpu.get_tpu_info().vmem_capacity_bytes)
    except Exception:
        vmem_cap = 64 << 20                # conservative (v7x per-TC physical)
    budget = min(64 << 20, int(vmem_cap * 0.70))     # v7x ~45 MiB, v5e/v6e 64 MiB
    vmem_limit = min(100 << 20, int(vmem_cap * 0.85))

    # ---- row_tile selection ---------------------------------------------------
    if row_tile is None:
        row_tile = 2048                    # mem-bound: biggest tile that fits
    row_tile = max(sub, (row_tile // sub) * sub)
    row_tile = min(row_tile, _round_up(N, sub))

    # Megacore clamp (>= 2 grid steps) only on chips with 2 TensorCores.
    # TODO(synk): switch the grid axis to pltpu.CORE_PARALLEL once verified to
    # shard across both v7x TensorCores; plain "parallel" is kept for safety.
    try:
        kind = jax.devices()[0].device_kind.lower()
        single_tc = any(s in kind for s in ("v5e", "v5 lite", "v6e", "v6 lite"))
    except Exception:
        single_tc = False
    if not single_tc:
        half = _round_up(pl.cdiv(N, 2), sub)
        row_tile = max(sub, min(row_tile, half))

    # ---- VMEM accounting with real lane padding (last dim -> ceil/128*128) ---
    x_row = _round_up(Din, lane)
    mask_row = lane                                   # (tile, 1) pads to 128 lanes
    eps_row = _round_up(Dz, lane) if sample else 0
    out_row = _round_up(3 * Dz, lane)
    # x2: every row block is double-buffered by the pipeline.
    bytes_per_row = 2 * itemsize * (x_row + mask_row + eps_row + out_row)

    # Grid-invariant weights/bias: still double-buffered by default pipelining.
    weight_bytes = 2 * itemsize * (_round_up(Din, sub) * _round_up(2 * Dz, lane)
                                   + sub * _round_up(2 * Dz, lane))

    avail = budget - weight_bytes
    if avail >= 4 * sub * bytes_per_row:
        max_rows = avail // bytes_per_row
        row_tile = min(row_tile, max(sub, (max_rows // sub) * sub))
    else:
        # Weights dominate VMEM (large Din*Dz): do NOT collapse to an 8-row
        # tile; keep a moderate tile and raise the scoped VMEM limit instead.
        row_tile = max(sub, min(row_tile, 512))
        vmem_limit = min(int(vmem_cap * 0.95),
                         weight_bytes + row_tile * bytes_per_row + (4 << 20))

    n_tiles = pl.cdiv(N, row_tile)

    # ---- flatten (no padding: Pallas masks the ragged last block) ------------
    x2 = x.reshape(N, Din)
    mask2 = mask.reshape(N, 1).astype(dt)

    # Fused weights / biases: [Din, 2*Dz], [1, 2*Dz]; native dtype of x.
    w = jnp.concatenate([params["wm"], params["wv"]], axis=1).astype(dt)
    b = jnp.concatenate([params["bm"], params["bv"]], axis=0).reshape(1, 2 * Dz).astype(dt)

    in_specs = [
        pl.BlockSpec((row_tile, Din), lambda i: (i, 0)),   # x
        pl.BlockSpec((Din, 2 * Dz), lambda i: (0, 0)),     # fused W (grid-invariant)
        pl.BlockSpec((1, 2 * Dz), lambda i: (0, 0)),       # fused bias
        pl.BlockSpec((row_tile, 1), lambda i: (i, 0)),     # mask
    ]
    args = [x2, w, b, mask2]
    if sample:
        eps2 = eps.reshape(N, Dz)
        in_specs.append(pl.BlockSpec((row_tile, Dz), lambda i: (i, 0)))
        args.append(eps2)

    out_shape = jax.ShapeDtypeStruct((N, 3 * Dz), dt)     # [mean | logvar | z]
    out_specs = pl.BlockSpec((row_tile, 3 * Dz), lambda i: (i, 0))

    cost = pl.CostEstimate(
        flops=2 * N * Din * 2 * Dz,
        transcendentals=(N * Dz if sample else 0),
        bytes_accessed=itemsize * (N * Din
                                   + N
                                   + (N * Dz if sample else 0)
                                   + Din * 2 * Dz + 2 * Dz
                                   + N * 3 * Dz),
    )

    kernel = partial(_gaussian_layer_kernel, dz=Dz, sample=sample)
    out = pl.pallas_call(
        kernel,
        out_shape=out_shape,
        grid_spec=pltpu.PrefetchScalarGridSpec(
            num_scalar_prefetch=0,
            grid=(n_tiles,),
            in_specs=in_specs,
            out_specs=out_specs,
        ),
        compiler_params=pltpu.CompilerParams(
            dimension_semantics=("parallel",),
            vmem_limit_bytes=int(vmem_limit)),
        cost_estimate=cost,
    )(*args)

    mean_qs = out[:, :Dz].reshape(B, L, Dz)
    logvar_qs = out[:, Dz:2 * Dz].reshape(B, L, Dz)
    z = out[:, 2 * Dz:].reshape(B, L, Dz)
    return z, mean_qs, logvar_qs


def _reference_forward(x, mask, params, eps, sample=True):
    mean = jnp.einsum("bld,dz->blz", x, params["wm"]) + params["bm"]
    logvar = jnp.einsum("bld,dz->blz", x, params["wv"]) + params["bv"]
    m = mask[..., None].astype(x.dtype)
    if sample:
        z = (mean + jnp.exp(0.5 * logvar) * eps) * m
    else:
        z = mean * m
    return z, mean, logvar


def init_params(key, input_size, latent_z_size):
    # Matches nn.Linear's U(-1/sqrt(fan_in), 1/sqrt(fan_in)) init.
    k1, k2, k3, k4 = jax.random.split(key, 4)
    bound = 1.0 / jnp.sqrt(input_size)
    return {
        "wm": jax.random.uniform(k1, (input_size, latent_z_size),
                                 jnp.float32, -bound, bound),
        "bm": jax.random.uniform(k2, (latent_z_size,),
                                 jnp.float32, -bound, bound),
        "wv": jax.random.uniform(k3, (input_size, latent_z_size),
                                 jnp.float32, -bound, bound),
        "bv": jax.random.uniform(k4, (latent_z_size,),
                                 jnp.float32, -bound, bound),
    }


if __name__ == "__main__":
    B, L, Din, Dz = 2, 8, 32, 16

    key = jax.random.PRNGKey(0)
    kx, kmask, keps, kparam = jax.random.split(key, 4)

    x = jax.random.normal(kx, (B, L, Din), jnp.float32)
    # mask: 1.0 for valid timesteps, last two timesteps of batch 1 masked out.
    mask = jnp.ones((B, L), jnp.float32).at[1, -2:].set(0.0)
    eps = jax.random.normal(keps, (B, L, Dz), jnp.float32)
    params = init_params(kparam, Din, Dz)

    z, mean_qs, logvar_qs = gaussian_layer_forward(
        x, mask, params, eps, sample=True)
    jax.block_until_ready((z, mean_qs, logvar_qs))

    z_ref, mean_ref, logvar_ref = _reference_forward(
        x, mask, params, eps, sample=True)

    assert jnp.allclose(z, z_ref, atol=1e-5, rtol=1e-5)
    assert jnp.allclose(mean_qs, mean_ref, atol=1e-5, rtol=1e-5)
    assert jnp.allclose(logvar_qs, logvar_ref, atol=1e-5, rtol=1e-5)

    # Also exercise the sample=False path (no eps DMA'd at all).
    z0, m0, lv0 = gaussian_layer_forward(x, mask, params, sample=False)
    jax.block_until_ready((z0, m0, lv0))
    z0_ref, m0_ref, lv0_ref = _reference_forward(x, mask, params, eps,
                                                 sample=False)
    assert jnp.allclose(z0, z0_ref, atol=1e-5, rtol=1e-5)
    assert jnp.allclose(m0, m0_ref, atol=1e-5, rtol=1e-5)
    assert jnp.allclose(lv0, lv0_ref, atol=1e-5, rtol=1e-5)

    print("KERNEL_OK")
</pallas_src>

<mosaic_0001>
module attributes {stable_mosaic.version = 11 : i64} {
  func.func @_gaussian_layer_kernel(%arg0: i32, %arg1: memref<8x32xf32, #tpu.memory_space<vmem>>, %arg2: memref<32x32xf32, #tpu.memory_space<vmem>>, %arg3: memref<1x32xf32, #tpu.memory_space<vmem>>, %arg4: memref<8x1xf32, #tpu.memory_space<vmem>>, %arg5: memref<8x16xf32, #tpu.memory_space<vmem>>, %arg6: memref<8x48xf32, #tpu.memory_space<vmem>>) attributes {dimension_semantics = [#tpu.dimension_semantics<parallel>], iteration_bounds = array<i64: 2>, scalar_prefetch = 0 : i64, scratch_operands = 0 : i64, tpu.core_type = #tpu.core_type<tc>, window_params = [{transform_indices = @transform_0, window_bounds = array<i64: 8, 32>}, {pipeline_mode = #tpu.pipeline_mode<synchronous>, transform_indices = @transform_1, window_bounds = array<i64: 32, 32>}, {pipeline_mode = #tpu.pipeline_mode<synchronous>, transform_indices = @transform_2, window_bounds = array<i64: 1, 32>}, {transform_indices = @transform_3, window_bounds = array<i64: 8, 1>}, {transform_indices = @transform_4, window_bounds = array<i64: 8, 16>}, {transform_indices = @transform_5, window_bounds = array<i64: 8, 48>}]} {
    %c0 = arith.constant 0 : index
    %c0_0 = arith.constant 0 : index
    %0 = vector.load %arg1[%c0, %c0_0] : memref<8x32xf32, #tpu.memory_space<vmem>>, vector<8x32xf32>
    %c0_1 = arith.constant 0 : index
    %c0_2 = arith.constant 0 : index
    %1 = vector.load %arg2[%c0_1, %c0_2] : memref<32x32xf32, #tpu.memory_space<vmem>>, vector<32x32xf32>
    %cst = arith.constant dense<0.000000e+00> : vector<8x32xf32>
    %2 = tpu.matmul %0, %1, %cst {dimension_numbers = #tpu.dot_dimension_numbers<[1], [0], [0], [1], [0, 0, 1, 1], [], []>} : vector<8x32xf32>, vector<32x32xf32>, vector<8x32xf32> -> vector<8x32xf32>
    %c0_3 = arith.constant 0 : index
    %c0_4 = arith.constant 0 : index
    %3 = vector.load %arg3[%c0_3, %c0_4] : memref<1x32xf32, #tpu.memory_space<vmem>>, vector<1x32xf32>
    %4 = vector.broadcast %3 : vector<1x32xf32> to vector<8x32xf32>
    %5 = arith.addf %2, %4 : vector<8x32xf32>
    %6 = vector.extract_strided_slice %5 {offsets = [0, 0], sizes = [8, 16], strides = [1, 1]} : vector<8x32xf32> to vector<8x16xf32>
    %c0_5 = arith.constant 0 : index
    %c0_6 = arith.constant 0 : index
    %7 = vector.load %arg4[%c0_5, %c0_6] : memref<8x1xf32, #tpu.memory_space<vmem>>, vector<8x1xf32>
    %8 = vector.extract_strided_slice %5 {offsets = [0, 16], sizes = [8, 16], strides = [1, 1]} : vector<8x32xf32> to vector<8x16xf32>
    %cst_7 = arith.constant 5.000000e-01 : f32
    %9 = vector.broadcast %cst_7 : f32 to vector<8x16xf32>
    %10 = arith.mulf %9, %8 : vector<8x16xf32>
    %11 = math.exp %10 : vector<8x16xf32>
    %c0_8 = arith.constant 0 : index
    %c0_9 = arith.constant 0 : index
    %12 = vector.load %arg5[%c0_8, %c0_9] : memref<8x16xf32, #tpu.memory_space<vmem>>, vector<8x16xf32>
    %13 = arith.mulf %11, %12 : vector<8x16xf32>
    %14 = arith.addf %6, %13 : vector<8x16xf32>
    %15 = vector.broadcast %7 : vector<8x1xf32> to vector<8x16xf32>
    %16 = arith.mulf %14, %15 : vector<8x16xf32>
    %17 = tpu.concatenate %5, %16 in 1 : vector<8x32xf32>, vector<8x16xf32> -> vector<8x48xf32>
    %c0_10 = arith.constant 0 : index
    %c0_11 = arith.constant 0 : index
    %18 = vector.load %arg6[%c0_10, %c0_11] : memref<8x48xf32, #tpu.memory_space<vmem>>, vector<8x48xf32>
    tpu.vector_store %arg6[%c0_10, %c0_11], %17 {strides = array<i32>} : memref<8x48xf32, #tpu.memory_space<vmem>>, vector<8x48xf32>,
    return
  }
  func.func @transform_0(%arg0: i32) -> (i32, i32) {
    %c0_i32 = arith.constant 0 : i32
    %c0_i32_0 = arith.constant 0 : i32
    return %arg0, %c0_i32 : i32, i32
  }
  func.func @transform_1(%arg0: i32) -> (i32, i32) {
    %c0_i32 = arith.constant 0 : i32
    %c0_i32_0 = arith.constant 0 : i32
    %c0_i32_1 = arith.constant 0 : i32
    return %c0_i32, %c0_i32_0 : i32, i32
  }
  func.func @transform_2(%arg0: i32) -> (i32, i32) {
    %c0_i32 = arith.constant 0 : i32
    %c0_i32_0 = arith.constant 0 : i32
    %c0_i32_1 = arith.constant 0 : i32
    return %c0_i32, %c0_i32_0 : i32, i32
  }
  func.func @transform_3(%arg0: i32) -> (i32, i32) {
    %c0_i32 = arith.constant 0 : i32
    %c0_i32_0 = arith.constant 0 : i32
    return %arg0, %c0_i32 : i32, i32
  }
  func.func @transform_4(%arg0: i32) -> (i32, i32) {
    %c0_i32 = arith.constant 0 : i32
    %c0_i32_0 = arith.constant 0 : i32
    return %arg0, %c0_i32 : i32, i32
  }
  func.func @transform_5(%arg0: i32) -> (i32, i32) {
    %c0_i32 = arith.constant 0 : i32
    %c0_i32_0 = arith.constant 0 : i32
    return %arg0, %c0_i32 : i32, i32
  }
}

</mosaic_0001>

<bundles_post_ra>
// kernel: tpu_custom_call.1
= control target key start
LH: loop header
LB: loop body
LE: loop exit
PB: predicated region body
PF: predicated region fallthrough
CT: control target
= control target key end

     0   :  { %10 = vsyncpa [#allocation3], 0  ;;  %s967_s0 = inlined_call_operand.vmem [shape: f32[16,32], index: 0, kind: input, shape index: {}]   ;;  %s968_s1 = inlined_call_operand.hbm [shape: f32[32,32], index: 1, kind: input, shape index: {}]   ;;  %s969_s2 = inlined_call_operand.vmem [shape: f32[1,32], index: 2, kind: input, shape index: {}]   ;;  %s970_s3 = inlined_call_operand.vmem [shape: f32[16,1], index: 3, kind: input, shape index: {}]   ;;  %s971_s4 = inlined_call_operand.hbm [shape: f32[16,16], index: 4, kind: input, shape index: {}]   ;;  %s972_s5 = inlined_call_operand.hbm [shape: f32[16,48], index: 5, kind: output, shape index: {}]  }
   0x1   :  { %11 = vsyncpa [#allocation6], 0 }
   0x2   :  { %13 = vsyncpa [#allocation6 + $0x1], 0 }
   0x3   :  { %14 = vsyncpa [#allocation4], 0 }
   0x4   :  { %16 = vsyncpa [#allocation4 + $0x1], 0  ;;  %s790_s18 = smov 0   ;;  %s792_s19 = smov 0  }
   0x5   :  { %s794_s20 = smov 0   ;;  %s796_s21 = smov 0  }
   0x6 LB: > { %s811_s22 = sadd.s32 4294967295, %s747_s21   ;;  %s523_s23 = sadd.s32 4294967294, %s747_s21   ;;  %s747_s21 = sphi %s796_s21, %s994_s21   ;;  %s743_s20 = sphi %s794_s20, %s993_s20   ;;  %s739_s19 = sphi %s792_s19, %s992_s19   ;;  %s735_s18 = sphi %s790_s18, %s991_s18  }
   0x7   : > { %p136_p0 = scmp.ne.s32.totalorder %s739_s19, %s735_s18  ;;  %p973_p1 = scmp.eq.s32.totalorder %s811_s22, 0 }
   0x8   : > { %p166_p3 = scmp.eq.s32.totalorder %s523_s23, 1  ;;  %p524_p5 = scmp.ge.s32.totalorder %s747_s21, 1 }
   0x9   : > { %p820_p4 = por %p973_p1, %p136_p0  ;;  %p173_p7 = scmp.lt.s32.totalorder %s747_s21, 3 }
   0xa   : > { %p825_p6 = por %p166_p3, %p136_p0  ;;  %s749_s27 = smov [#allocation2]  }
   0xb   : > { %s977_s24 = scalar_select %p820_p4, 1, 0 }
   0xc   : > { %s978_s25 = scalar_select %p825_p6, 1, 0 }
   0xd   : > { %p830_p8 = pnand %p524_p5, %p173_p7  ;;  %s185_s28 = sshll.u32 %s749_s27, 4  ;;  %s186_s28 = int_to_ptr.vmem [resolvable:$true] %s185_s28 }
   0xe   : > { %s844_s30 = sadd.s32 1, %s747_s21   ;;  %s123_s6 = sadd.s32 1, %s743_s20 }
   0xf   : > { %s979_s26 = scalar_select %p830_p8, 1, 0 }
  0x10   : > { %p565_p9 = pneg %p830_p8  ;;  %s120_s7 = ssub.s32 %s747_s21, %s844_s30 }
  0x11   : > { %s636_s8 = scalar_lea.vmem %s186_s28, 512  ;;  %p644_p5 = scmp.lt.s32.totalorder %s186_s28, %s186_s28 }
  0x12   : > { %p839_p11 = pnand %p565_p9, %p973_p1  ;;  %p637_p13 = scmp.ne.s32.totalorder %s186_s28, %s636_s8 }
  0x13   : > { %p645_p7 = scmp.lt.s32.totalorder %s636_s8, %s636_s8 }
  0x14   : > { %p627_p12 = pneg %p839_p11 }
  0x15   : > { %p646_p10 = por %p645_p7, %p644_p5 }
  0x16   : > { %p639_p0 = pnand %p637_p13, %p627_p12 }
  0x18   : > { %p640_p3 = pneg %p639_p0 }
  0x1a   : > { %p647_p2 = pnand %p646_p10, %p640_p3 }
  0x1c   : > { %650 = shalt.err (!%p647_p2)
}
  0x1d   : > { %s750_s9 = smov 128   ;;  %s751_s10 = smov 8  }
  0x1e   : > { %568 = dma.hbm_to_vmem [thread:$0]  (!%p839_p11), %s968_s1, 512, %s186_s28, [#allocation3], %s750_s9, %s750_s9, %s751_s10  }
  0x1f   : > { %p121_p9 = scmp.eq.s32.totalorder %s120_s7, 0  ;;  %p130_p12 = scmp.ne.s32.totalorder %s743_s20, %s739_s19 }
  0x20   : > { %p131_p10 = scmp.eq.s32.totalorder %s747_s21, 0  ;;  %p578_p2 = scmp.lt.s32.totalorder %s747_s21, 2 }
  0x21   : > { %s861_s13 = scalar_select %p121_p9, %s743_s20, %s123_s6  }
  0x22   : > { %p132_p13 = por %p131_p10, %p130_p12  ;;  %p981_p0 = scmp.eq.s32.totalorder %s811_s22, 1 }
  0x23   : > { %s216_s15 = sand.u32 1, %s743_s20   ;;  %s528_s16 = sshll.u32 %s747_s21, 7 }
  0x24   : > { %p865_p3 = por %p981_p0, %p130_p12  ;;  %s527_s17 = sshll.u32 %s216_s15, 3 }
  0x25   : > { %s874_s29 = scalar_lea.hbm %s971_s4, %s528_s16  ;;  %s220_s28 = scalar_lea.vmem [#allocation5], %s527_s17 }
  0x26   : > { %s982_s14 = scalar_select %p865_p3, 1, 0 }
  0x27   : > { %s227_s6 = sshll.u32 %s220_s28, 4  ;;  %p876_p11 = pnand %p578_p2, %p132_p13  ;;  %s228_s6 = int_to_ptr.vmem [resolvable:$true] %s227_s6 }
  0x28   : > { %s217_s8 = scalar_lea.sflag [#allocation6], %s216_s15  ;;  %s651_s9 = scalar_lea.hbm %s874_s29, 128 }
  0x29   : > { %p652_p5 = scmp.ne.s32.totalorder %s874_s29, %s651_s9  ;;  %p653_p7 = pneg %p876_p11 }
  0x2a   : > { %s656_s12 = scalar_lea.hbm %s971_s4, 256  ;;  %p657_p10 = scmp.lt.s32.totalorder %s874_s29, %s971_s4 }
  0x2b   : > { %p654_p9 = pnand %p653_p7, %p652_p5  ;;  %p658_p2 = scmp.lt.s32.totalorder %s656_s12, %s651_s9 }
  0x2d   : > { %p655_p12 = pneg %p654_p9  ;;  %p659_p13 = por %p658_p2, %p657_p10 }
  0x2f   : > { %p660_p0 = pnand %p659_p13, %p655_p12 }
  0x31   : > { %663 = shalt.err (!%p660_p0)
}
  0x32   : > { %s664_s23 = scalar_lea.vmem %s228_s6, 128  ;;  %s752_s15 = smov [#allocation5]  }
  0x33   : > { %p665_p1 = scmp.ne.s32.totalorder %s228_s6, %s664_s23  ;;  %s669_s27 = sshll.u32 %s752_s15, 4  ;;  %s670_s27 = int_to_ptr.vmem [resolvable:$false] %s669_s27 }
  0x34   : > { %s671_s28 = scalar_lea.vmem %s670_s27, 256  ;;  %p672_p5 = scmp.lt.s32.totalorder %s228_s6, %s670_s27 }
  0x35   : > { %p667_p6 = pnand %p665_p1, %p653_p7  ;;  %p673_p9 = scmp.lt.s32.totalorder %s671_s28, %s664_s23 }
  0x37   : > { %p668_p3 = pneg %p667_p6  ;;  %p674_p4 = por %p673_p9, %p672_p5 }
  0x39   : > { %p675_p8 = pnand %p674_p4, %p668_p3 }
  0x3b   : > { %678 = shalt.err (!%p675_p8)
}
  0x3c   : > { %572 = dma.hbm_to_vmem [thread:$0]  (!%p876_p11), %s874_s29, 128, %s228_s6, %s217_s8  }
  0x3d   : > { %p984_p12 = scmp.ne.s32.totalorder %s979_s26, 0 }
  0x3e   : > { %p985_p10 = scmp.eq.s32.totalorder (!%p984_p12), %s811_s22, 0 }
  0x3f   : > { %236 = sbr.rel (%p984_p12) target bundleno = 545 (0x221), region = 40 }
  0x44   : > { %722 = dma.done.wait (%p985_p10), [#allocation3], 512   ;;  %p986_p1 = pmov %p985_p10 }
  0x45   : > { %s901_s9 = sand.u32 1, %s739_s19   ;;  %p987_p4 = scmp.ne.s32.totalorder %s977_s24, 0 }
  0x46   : > { %724 = vsyncadd (%p986_p1), [#allocation3], 4294966784  ;;  %s531_s10 = sshll.u32 %s901_s9, 3  ;;  %s243_s7 = scalar_lea.sflag [#allocation6], %s901_s9 }
  0x47   : > { %s246_s29 = scalar_lea.vmem [#allocation5], %s531_s10 }
  0x48   : > { %726 = dma.done.wait (%p987_p4), %s243_s7, 128  }
  0x49   : > { %728 = vsyncadd (%p987_p4), %s243_s7, 4294967168  ;;  %p281_p6 = scmp.lt.s32.totalorder %s811_s22, 1  ;;  %v753_v0 = vmov 0.0   ;;  %vm754_vm0 = vmmov 0   ;;  %v293_v1 = vld [vmem:[#allocation2 + $0x18] sm:$0xff]  ;;  %v292_v2 = vld [vmem:[#allocation2 + $0x10] sm:$0xff] }
  0x4a   : > { %546 = vmatprep.subr.mxu0 %v753_v0  ;;  %554 = vmatprep.mubr.msk.f32.mxu0 %vm754_vm0, %v753_v0  ;;  %v379_v3 = vld [vmem:[%s246_s29] sm:$0xff]  ;;  %s755_s12 = smov 16   ;;  %vm301_vm1 = vcmask 261120   ;;  %v756_v7 = vmov 0   ;;  %s757_s28 = smov 112   ;;  %vm401_vm2 = vcmask 392192  }
  0x4b   : > { %s282_s26 = scalar_select %p281_p6, %s811_s22, 1  ;;  %547 = vmatpush3.msra.mxu0 %v293_v1  ;;  %v291_v4 = vld [vmem:[#allocation2 + $0x8] sm:$0xff]  ;;  %381 = vrot.lane.b32.xlu0 %v379_v3, %s755_s12  ;;  %v290_v5 = vld [vmem:[#allocation2] sm:$0xff] }
  0x4c   : > { %548 = vmatprep.subr.mxu0 %v753_v0  ;;  %622 = vset.pattern.permute.xlu0 %v756_v7  ;;  %v535_v9 = vld [vmem:[%s969_s2] ss:$0 sm:$0xff]  ;;  %s758_s7 = smov 32   ;;  %s538_s29 = sshll.u32 %s811_s22, 7 }
  0x4d   : > { %s533_s6 = sshll.u32 %s282_s26, 3  ;;  %549 = vmatpush3.msra.mxu0 %v292_v2  ;;  %s280_s26 = scalar_lea.vmem [#allocation7], %s531_s10 }
  0x4e   : > { %s284_s24 = scalar_lea.vmem %s967_s0, %s533_s6  ;;  %550 = vmatprep.subr.mxu0 %v753_v0  ;;  %s288_s23 = scalar_lea.vmem %s970_s3, %s533_s6 }
  0x4f   : > { %551 = vmatpush3.msra.mxu0 %v291_v4  ;;  %v289_v6 = vld [vmem:[%s284_s24] sm:$0xff]  ;;  %s417_s6 = sshll.u32 %s280_s26, 4  ;;  %s929_s24 = scalar_lea.hbm %s972_s5, %s538_s29  ;;  %s418_s6 = int_to_ptr.vmem [resolvable:$true] %s417_s6 }
  0x50   : > { %552 = vmatprep.subr.mxu0 %v753_v0  ;;  %v375_v8 = vld [vmem:[%s288_s23] sm:$0xff]  ;;  %s404_s12 = scalar_lea.sflag [#allocation4], %s901_s9  ;;  %s679_s16 = scalar_lea.vmem %s418_s6, 128 }
  0x51   : > { %553 = vmatpush3.msra.mxu0 %v290_v5  ;;  %392 = vperm.xlu0 %622, %v375_v8   ;;  %p680_p8 = scmp.ne.s32.totalorder %s418_s6, %s679_s16  ;;  %p988_p3 = scmp.ne.s32.totalorder %s982_s14, 0 }
  0x52   : > { %555 = vmatmul.mubr.msk.f32.vlgmr.msra.gmra.mxu0 %vm301_vm1, %v289_v6  ;;  %s759_s22 = smov [#allocation7]  }
  0x53   : > { %p681_p11 = pnand %p680_p8, %p988_p3  ;;  %s683_s10 = sshll.u32 %s759_s22, 4  ;;  %s684_s10 = int_to_ptr.vmem [resolvable:$false] %s683_s10 }
  0x54   : > { %s685_s17 = scalar_lea.vmem %s684_s10, 256  ;;  %p686_p2 = scmp.lt.s32.totalorder %s418_s6, %s684_s10 }
  0x55   : > { %p682_p7 = pneg %p681_p11  ;;  %p687_p13 = scmp.lt.s32.totalorder %s685_s17, %s679_s16 }
  0x57   : > { %p688_p0 = por %p687_p13, %p686_p2 }
  0x59   : > { %p689_p5 = pnand %p688_p0, %p682_p7 }
  0xbd   : > { %v382_v15 = vpop.permute.xlu0 %381 }
  0xcc   : > { %v393_v19 = vpop.permute.xlu0 %392 }
 0x112   : > { %v371_v10 = vpop.f32.mrf.mxu0 }
 0x113   : > { %v372_v11 = vadd.f32 %v535_v9, %v371_v10 }
 0x114   : > { %v556_v12 = vpop.f32.mrf.mxu0 }
 0x115   : > { %v376_v13 = vmul.f32 0.5, %v372_v11 }
 0x117   : > { %v377_v14 = vmul.f32 1.442695, %v376_v13 }
 0x119   : > { %623 = vpow2.f32 %v377_v14 }
 0x126   : > { %v624_v16 = vpop.eup %623 }
 0x127   : > { %v384_v17 = vmul.f32 %v624_v16, %v382_v15 }
 0x129   : > { %386 = vrot.lane.b32.xlu1 %v384_v17, %s757_s28 }
 0x19b   : > { %v387_v18 = vpop.permute.xlu1 %386 }
 0x19c   : > { %v389_v20 = vadd.f32 %v387_v18, %v372_v11 }
 0x19e   : > { %v395_v21 = vmul.f32 %v393_v19, %v389_v20 }
 0x1a0   : > { %397 = vrot.lane.b32.xlu1 %v395_v21, %s758_s7 }
 0x212   : > { %v398_v22 = vpop.permute.xlu1 %397 }
 0x213   : > { %v400_v23 = vsel %vm301_vm1, %v372_v11, %v398_v22 }
 0x214   : > { %402 = vst.msk [vmem:[%s280_s26] sm:$0xff] %vm401_vm2, %v400_v23 }
 0x215   : > { %692 = shalt.err (!%p689_p5)
}
 0x216   : > { %s693_s23 = scalar_lea.hbm %s929_s24, 128  ;;  %s697_s27 = scalar_lea.hbm %s972_s5, 256 }
 0x217   : > { %p694_p9 = scmp.ne.s32.totalorder %s929_s24, %s693_s23  ;;  %p698_p1 = scmp.lt.s32.totalorder %s929_s24, %s972_s5 }
 0x218   : > { %p699_p4 = scmp.lt.s32.totalorder %s697_s27, %s693_s23 }
 0x219   : > { %p695_p12 = pnand %p694_p9, %p988_p3 }
 0x21a   : > { %p700_p6 = por %p699_p4, %p698_p1 }
 0x21b   : > { %p696_p10 = pneg %p695_p12 }
 0x21d   : > { %p701_p8 = pnand %p700_p6, %p696_p10 }
 0x21f   : > { %704 = shalt.err (!%p701_p8)
}
 0x220   : > { %563 = dma.vmem_to_hbm [thread:$0]  (%p988_p3), %s418_s6, 128, %s929_s24, %s404_s12  }
 0x221 PF: > { %s429_s29 = sand.u32 1, %s735_s18   ;;  %p989_p11 = scmp.ne.s32.totalorder %s978_s25, 0 }
 0x222   : > { %p990_p7 = scmp.ge.s32.totalorder %s747_s21, 2  ;;  %s430_s26 = scalar_lea.sflag [#allocation4], %s429_s29 }
 0x224   : > { %p574_p2 = pnand %p990_p7, %p989_p11 }
 0x226   : > { %p575_p13 = pneg %p574_p2 }
 0x228   : > { %730 = dma.done.wait (%p575_p13), %s430_s26, 128  }
 0x229   : > { %732 = vsyncadd (%p575_p13), %s430_s26, 4294967168  ;;  %p19_p0 = scmp.ge.s32.totalorder %s844_s30, 4   ;;  %s991_s18 = smov %s739_s19 }
 0x22a   : > { %s992_s19 = smov %s743_s20  ;;  %s993_s20 = smov %s861_s13 }
 0x22b   : > { %s994_s21 = smov %s844_s30  ;;  %21 = sbr.rel (!%p19_p0) target bundleno = 6 (0x6), region = 96 }
 0x230   :  { %435 = vsyncpa [#allocation3], 1 }
 0x231   :  { %437 = vsyncpa [#allocation3 + $0x1], 1 }
 0x232   :  { %438 = vsyncpa [#allocation6], 1 }
 0x233   :  { %440 = vsyncpa [#allocation6 + $0x1], 1 }
 0x234   :  { %441 = vsyncpa [#allocation4], 1 }
 0x235   :  { %443 = vsyncpa [#allocation4 + $0x1], 1 }

</bundles_post_ra>
